<compile_context>
chip_gen: v7x
topology: tpu7x:2x2x1
jax: 0.10.0
libtpu: 0.0.40
codegen_flags: <defaults>
</compile_context>

<pallas_src>
import functools
import math

import jax
import jax.numpy as jnp
from jax.experimental import pallas as pl
from jax.experimental.pallas import tpu as pltpu


# -----------------------------------------------------------------------------
# 2-D matmul kernels (grid = (M_tiles, N_tiles, K_tiles), K last / arbitrary)
# -----------------------------------------------------------------------------

def _mm_single_k(a_ref, b_ref, o_ref, *, cast_bf16=False, precision=None):
    a, b = a_ref[...], b_ref[...]
    if cast_bf16:
        a, b = a.astype(jnp.bfloat16), b.astype(jnp.bfloat16)
    o_ref[...] = jnp.dot(
        a, b, preferred_element_type=jnp.float32, precision=precision
    ).astype(o_ref.dtype)


def _mm_acc_into_out(a_ref, b_ref, o_ref, *, cast_bf16=False, precision=None):
    """f32 output: accumulate directly into the VMEM-resident output block."""
    @pl.when(pl.program_id(2) == 0)
    def _init():
        o_ref[...] = jnp.zeros_like(o_ref)

    a, b = a_ref[...], b_ref[...]
    if cast_bf16:
        a, b = a.astype(jnp.bfloat16), b.astype(jnp.bfloat16)
    o_ref[...] += jnp.dot(a, b, preferred_element_type=jnp.float32,
                          precision=precision)


def _mm_acc_scratch(a_ref, b_ref, o_ref, acc_ref, *, cast_bf16=False,
                    precision=None):
    """Low-precision output: f32 scratch accumulator with init/finalize."""
    k = pl.program_id(2)

    @pl.when(k == 0)
    def _init():
        acc_ref[...] = jnp.zeros_like(acc_ref)

    a, b = a_ref[...], b_ref[...]
    if cast_bf16:
        a, b = a.astype(jnp.bfloat16), b.astype(jnp.bfloat16)
    acc_ref[...] += jnp.dot(a, b, preferred_element_type=jnp.float32,
                            precision=precision)

    @pl.when(k == pl.num_programs(2) - 1)
    def _finalize():
        o_ref[...] = acc_ref[...].astype(o_ref.dtype)


# -----------------------------------------------------------------------------
# Batched matmul kernels (grid = (batch_blocks, M_tiles, N_tiles, K_tiles))
# -----------------------------------------------------------------------------

def _bmm_compute(a_ref, b_ref, cast_bf16, precision):
    a, b = a_ref[...], b_ref[...]
    if cast_bf16:
        a, b = a.astype(jnp.bfloat16), b.astype(jnp.bfloat16)
    if a.shape[0] == 1 and b.shape[0] > 1:      # A broadcast over the batch
        a = jnp.broadcast_to(a, (b.shape[0],) + a.shape[1:])
    return jnp.einsum("bmk,bkn->bmn", a, b,
                      preferred_element_type=jnp.float32, precision=precision)


def _bmm_single_k(a_ref, b_ref, o_ref, *, cast_bf16=False, precision=None):
    o_ref[...] = _bmm_compute(a_ref, b_ref, cast_bf16, precision).astype(o_ref.dtype)


def _bmm_acc_into_out(a_ref, b_ref, o_ref, *, cast_bf16=False, precision=None):
    @pl.when(pl.program_id(3) == 0)
    def _init():
        o_ref[...] = jnp.zeros_like(o_ref)
    o_ref[...] += _bmm_compute(a_ref, b_ref, cast_bf16, precision)


def _bmm_acc_scratch(a_ref, b_ref, o_ref, acc_ref, *, cast_bf16=False,
                     precision=None):
    k = pl.program_id(3)

    @pl.when(k == 0)
    def _init():
        acc_ref[...] = jnp.zeros_like(acc_ref)

    acc_ref[...] += _bmm_compute(a_ref, b_ref, cast_bf16, precision)

    @pl.when(k == pl.num_programs(3) - 1)
    def _finalize():
        o_ref[...] = acc_ref[...].astype(o_ref.dtype)


# -----------------------------------------------------------------------------
# Tile selection / padding helpers
# -----------------------------------------------------------------------------

_TM_CAP, _TN_CAP, _TK_CAP = 512, 512, 2048


def _cdiv(a, b):
    return -(-a // b)


def _vmem_limit_and_budget():
    """Per-generation VMEM limit (passed to Mosaic) and working-set budget."""
    phys = None
    try:
        phys = getattr(pltpu.get_tpu_info(), "vmem_capacity_bytes", None)
    except Exception:
        phys = None
    if not phys:
        phys = 64 * 1024 * 1024            # conservative: fits v5e/v6e/v7x
    limit = max(32 * 1024 * 1024,
                min(int(phys) - 16 * 1024 * 1024, 112 * 1024 * 1024))
    return limit, limit // 2               # budget for double-buffered tiles


def _choose_tile(dim, cap, align):
    """Largest legal tile <= cap: full dim if it fits, else an align-multiple
    divisor of dim (no padding), else an aligned tile (padding required)."""
    if dim <= cap:
        return int(dim)
    t = (cap // align) * align
    while t >= align:
        if dim % t == 0:
            return int(t)
        t -= align
    return int((cap // align) * align)


def _select_tiles(m, k, n, a_bytes, b_bytes, o_bytes, budget, need_scratch):
    tm_cap, tn_cap, tk_cap = _TM_CAP, _TN_CAP, _TK_CAP
    while True:
        tm = _choose_tile(m, tm_cap, 8)
        tn = _choose_tile(n, tn_cap, 128)
        tk = _choose_tile(k, tk_cap, 128)
        ws = (2 * (tm * tk * a_bytes + tk * tn * b_bytes)   # double-buffered in
              + 2 * tm * tn * o_bytes                        # double-buffered out
              + (tm * tn * 4 if need_scratch else 0))        # f32 accumulator
        if ws <= budget:
            return tm, tn, tk
        if tk > 256 and tk_cap > 256:
            tk_cap = max(256, tk_cap // 2)
        elif tn > 128 and tn_cap > 128:
            tn_cap = max(128, tn_cap // 2)
        elif tm > 128 and tm_cap > 128:
            tm_cap = max(128, tm_cap // 2)
        else:
            return tm, tn, tk


def _largest_divisor_leq(n, x):
    x = max(1, min(n, x))
    for d in range(x, 0, -1):
        if n % d == 0:
            return d
    return 1


def _pad_to(x, axis, tile):
    pad = (-x.shape[axis]) % tile
    if pad == 0:
        return x
    widths = [(0, 0)] * x.ndim
    widths[axis] = (0, pad)
    return jnp.pad(x, widths)


def _batch_kind(shape_batch, full_batch):
    """'none' = no real batch, 'full' = reshape-to-(BATCH,...) is a pure view,
    'mixed' = partial broadcast (needs materialization)."""
    if all(d == 1 for d in shape_batch):
        return "none"
    padded = (1,) * (len(full_batch) - len(shape_batch)) + tuple(shape_batch)
    if padded == tuple(full_batch):
        return "full"
    return "mixed"


# -----------------------------------------------------------------------------
# pallas_call drivers
# -----------------------------------------------------------------------------

def _matmul_2d(A2, B2, out_dtype, cast_bf16, precision):
    M, K = A2.shape
    N = B2.shape[1]
    limit, budget = _vmem_limit_and_budget()
    need_scratch = jnp.dtype(out_dtype) != jnp.dtype(jnp.float32)
    tm, tn, tk = _select_tiles(M, K, N, A2.dtype.itemsize, B2.dtype.itemsize,
                               jnp.dtype(out_dtype).itemsize, budget,
                               need_scratch)

    # v7x: keep >=2 parallel iterations so both TensorCores get work.
    if _cdiv(M, tm) * _cdiv(N, tn) == 1:
        if M >= 16 and (M // 2) % 8 == 0:
            tm = M // 2
        elif N >= 256 and (N // 2) % 128 == 0:
            tn = N // 2

    A2 = _pad_to(_pad_to(A2, 0, tm), 1, tk)
    B2 = _pad_to(_pad_to(B2, 0, tk), 1, tn)
    Mp, Kp = A2.shape
    Np = B2.shape[1]
    grid = (Mp // tm, Np // tn, Kp // tk)

    if grid[2] == 1:
        kernel = functools.partial(_mm_single_k, cast_bf16=cast_bf16,
                                   precision=precision)
        scratch = []
    elif not need_scratch:
        kernel = functools.partial(_mm_acc_into_out, cast_bf16=cast_bf16,
                                   precision=precision)
        scratch = []
    else:
        kernel = functools.partial(_mm_acc_scratch, cast_bf16=cast_bf16,
                                   precision=precision)
        scratch = [pltpu.VMEM((tm, tn), jnp.float32)]

    flops = 2 * Mp * Kp * Np
    bytes_accessed = (A2.size * A2.dtype.itemsize + B2.size * B2.dtype.itemsize
                      + Mp * Np * jnp.dtype(out_dtype).itemsize)

    out = pl.pallas_call(
        kernel,
        out_shape=jax.ShapeDtypeStruct((Mp, Np), out_dtype),
        grid_spec=pltpu.PrefetchScalarGridSpec(
            num_scalar_prefetch=0,
            grid=grid,
            in_specs=[pl.BlockSpec((tm, tk), lambda i, j, k: (i, k)),
                      pl.BlockSpec((tk, tn), lambda i, j, k: (k, j))],
            out_specs=pl.BlockSpec((tm, tn), lambda i, j, k: (i, j)),
            scratch_shapes=scratch),
        compiler_params=pltpu.CompilerParams(
            dimension_semantics=("parallel", "parallel", "arbitrary"),
            vmem_limit_bytes=limit),
        cost_estimate=pl.CostEstimate(flops=flops, transcendentals=0,
                                      bytes_accessed=bytes_accessed),
    )(A2, B2)

    if (Mp, Np) != (M, N):
        out = out[:M, :N]
    return out


def _matmul_batched(A3, B3, out_dtype, cast_bf16, precision):
    BA, M, K = A3.shape
    BATCH, _, N = B3.shape
    limit, budget = _vmem_limit_and_budget()
    need_scratch = jnp.dtype(out_dtype) != jnp.dtype(jnp.float32)
    tm, tn, tk = _select_tiles(M, K, N, A3.dtype.itemsize, B3.dtype.itemsize,
                               jnp.dtype(out_dtype).itemsize, budget,
                               need_scratch)

    per_batch = (2 * (tm * tk * A3.dtype.itemsize + tk * tn * B3.dtype.itemsize)
                 + 2 * tm * tn * jnp.dtype(out_dtype).itemsize + tm * tn * 4)
    bblk = _largest_divisor_leq(BATCH, max(1, budget // per_batch))

    # v7x: keep >=2 parallel iterations when possible.
    if (BATCH // bblk) * _cdiv(M, tm) * _cdiv(N, tn) == 1 and BATCH % 2 == 0:
        bblk = _largest_divisor_leq(BATCH, BATCH // 2)

    a_bcast = (BA == 1)
    ablk = 1 if a_bcast else bblk

    A3 = _pad_to(_pad_to(A3, 1, tm), 2, tk)
    B3 = _pad_to(_pad_to(B3, 1, tk), 2, tn)
    Mp, Kp = A3.shape[1], A3.shape[2]
    Np = B3.shape[2]
    grid = (BATCH // bblk, Mp // tm, Np // tn, Kp // tk)

    a_index = ((lambda b, i, j, k: (0, i, k)) if a_bcast
               else (lambda b, i, j, k: (b, i, k)))
    in_specs = [pl.BlockSpec((ablk, tm, tk), a_index),
                pl.BlockSpec((bblk, tk, tn), lambda b, i, j, k: (b, k, j))]
    out_specs = pl.BlockSpec((bblk, tm, tn), lambda b, i, j, k: (b, i, j))

    if grid[3] == 1:
        kernel = functools.partial(_bmm_single_k, cast_bf16=cast_bf16,
                                   precision=precision)
        scratch = []
    elif not need_scratch:
        kernel = functools.partial(_bmm_acc_into_out, cast_bf16=cast_bf16,
                                   precision=precision)
        scratch = []
    else:
        kernel = functools.partial(_bmm_acc_scratch, cast_bf16=cast_bf16,
                                   precision=precision)
        scratch = [pltpu.VMEM((bblk, tm, tn), jnp.float32)]

    flops = 2 * BATCH * Mp * Kp * Np
    bytes_accessed = (A3.size * A3.dtype.itemsize + B3.size * B3.dtype.itemsize
                      + BATCH * Mp * Np * jnp.dtype(out_dtype).itemsize)

    out = pl.pallas_call(
        kernel,
        out_shape=jax.ShapeDtypeStruct((BATCH, Mp, Np), out_dtype),
        grid_spec=pltpu.PrefetchScalarGridSpec(
            num_scalar_prefetch=0,
            grid=grid,
            in_specs=in_specs,
            out_specs=out_specs,
            scratch_shapes=scratch),
        compiler_params=pltpu.CompilerParams(
            dimension_semantics=("parallel", "parallel", "parallel",
                                 "arbitrary"),
            vmem_limit_bytes=limit),
        cost_estimate=pl.CostEstimate(flops=flops, transcendentals=0,
                                      bytes_accessed=bytes_accessed),
    )(A3, B3)

    if (Mp, Np) != (M, N):
        out = out[:, :M, :N]
    return out


# -----------------------------------------------------------------------------
# Wrapper (QuantMatMul.forward, default quant state)
# -----------------------------------------------------------------------------

def quant_matmul(A, B, use_input_quant=False, *, allow_bf16=False,
                 precision=None):
    """Pallas TPU implementation of QuantMatMul.forward (identity-quant path)."""
    if use_input_quant:
        # TODO(synk): quantizer bodies not provided; quantized path not implemented.
        raise NotImplementedError("use_input_quant=True path not implemented")

    A = jnp.asarray(A)
    B = jnp.asarray(B)
    assert A.ndim >= 2 and B.ndim >= 2, "A and B must be at least 2-D"
    assert A.shape[-1] == B.shape[-2], "contraction dims must match"

    M, K = A.shape[-2:]
    N = B.shape[-1]
    batch_shape = jnp.broadcast_shapes(A.shape[:-2], B.shape[:-2])
    BATCH = int(math.prod(batch_shape))
    out_dtype = jnp.result_type(A.dtype, B.dtype)
    cast_bf16 = (bool(allow_bf16)
                 and jnp.dtype(A.dtype) == jnp.dtype(jnp.float32)
                 and jnp.dtype(B.dtype) == jnp.dtype(jnp.float32))

    b_kind = _batch_kind(B.shape[:-2], batch_shape)

    if b_kind == "none":
        # Shared B: fold the batch into M -> one row-dense 2-D matmul; B is read
        # from HBM exactly once and no broadcast copy is materialized.
        A2 = A.reshape(BATCH * M, K)
        B2 = B.reshape(K, N)
        out = _matmul_2d(A2, B2, out_dtype, cast_bf16, precision)
        return out.reshape(*batch_shape, M, N)

    # Genuinely batched B.
    if N < 128:
        # Lane-narrow batched output (masked vst.msk stores): XLA's batched dot
        # is the better tool here -- per performance review.
        return jnp.matmul(A, B).astype(out_dtype)

    if b_kind == "full":
        B3 = B.reshape(BATCH, K, N)
    else:
        # TODO(synk): partially-broadcast batched B still materializes a copy.
        B3 = jnp.broadcast_to(B, batch_shape + (K, N)).reshape(BATCH, K, N)

    a_kind = _batch_kind(A.shape[:-2], batch_shape)
    if a_kind == "none":
        A3 = A.reshape(1, M, K)                    # broadcast handled by index_map
    elif a_kind == "full":
        A3 = A.reshape(BATCH, M, K)
    else:
        A3 = jnp.broadcast_to(A, batch_shape + (M, K)).reshape(BATCH, M, K)

    out = _matmul_batched(A3, B3, out_dtype, cast_bf16, precision)
    return out.reshape(*batch_shape, M, N)


# -----------------------------------------------------------------------------
# Self-test
# -----------------------------------------------------------------------------

if __name__ == "__main__":
    key = jax.random.PRNGKey(0)
    k1, k2, k3, k4, k5, k6 = jax.random.split(key, 6)

    # Attention-like operands: batch=2, heads=4, seq=8, hidden=32.
    A = jax.random.normal(k1, (2, 4, 8, 32), dtype=jnp.float32)     # [B,H,M,K]
    Bn = jax.random.normal(k2, (2, 4, 32, 8), dtype=jnp.float32)    # batched, narrow N
    Bw = jax.random.normal(k3, (2, 4, 32, 128), dtype=jnp.float32)  # batched, lane-dense N
    B2 = jax.random.normal(k4, (32, 8), dtype=jnp.float32)          # shared 2-D B

    # 1) Shared-B fold path (batch folded into M, Pallas 2-D kernel).
    out1 = jax.block_until_ready(quant_matmul(A, B2))
    ref1 = jnp.einsum("bhmk,kn->bhmn", A, B2)
    assert out1.shape == (2, 4, 8, 8)
    assert jnp.allclose(out1, ref1, atol=1e-4, rtol=1e-4)

    # 2) Genuinely batched B with lane-dense output (Pallas batched kernel).
    out2 = jax.block_until_ready(quant_matmul(A, Bw))
    ref2 = jnp.einsum("bhmk,bhkn->bhmn", A, Bw)
    assert out2.shape == (2, 4, 8, 128)
    assert jnp.allclose(out2, ref2, atol=1e-4, rtol=1e-4)

    # 3) Genuinely batched B with N < 128: XLA fallback path (semantics check).
    out3 = jax.block_until_ready(quant_matmul(A, Bn))
    ref3 = jnp.einsum("bhmk,bhkn->bhmn", A, Bn)
    assert out3.shape == (2, 4, 8, 8)
    assert jnp.allclose(out3, ref3, atol=1e-4, rtol=1e-4)

    # 4) Larger 2-D matmul exercising the K-tiled accumulate-into-output path.
    A4 = jax.random.normal(k5, (128, 4096), dtype=jnp.float32)
    B4 = jax.random.normal(k6, (4096, 256), dtype=jnp.float32)
    out4 = jax.block_until_ready(quant_matmul(A4, B4))
    ref4 = jnp.dot(A4, B4, precision=jax.lax.Precision.HIGHEST)
    assert out4.shape == (128, 256)
    assert jnp.allclose(out4, ref4, atol=5e-1, rtol=1e-2)

    # 5) Opt-in bf16 fast path (in-kernel cast, f32 accumulation).
    out5 = jax.block_until_ready(quant_matmul(A, B2, allow_bf16=True))
    assert jnp.allclose(out5, ref1, atol=2e-1, rtol=5e-2)

    print("KERNEL_OK")
</pallas_src>

<mosaic_0001>
module attributes {stable_mosaic.version = 11 : i64} {
  func.func @_mm_single_k(%arg0: i32, %arg1: i32, %arg2: i32, %arg3: memref<32x32xf32, #tpu.memory_space<vmem>>, %arg4: memref<32x8xf32, #tpu.memory_space<vmem>>, %arg5: memref<32x8xf32, #tpu.memory_space<vmem>>) attributes {dimension_semantics = [#tpu.dimension_semantics<parallel>, #tpu.dimension_semantics<parallel>, #tpu.dimension_semantics<arbitrary>], iteration_bounds = array<i64: 2, 1, 1>, scalar_prefetch = 0 : i64, scratch_operands = 0 : i64, tpu.core_type = #tpu.core_type<tc>, window_params = [{transform_indices = @transform_0, window_bounds = array<i64: 32, 32>}, {transform_indices = @transform_1, window_bounds = array<i64: 32, 8>}, {transform_indices = @transform_2, window_bounds = array<i64: 32, 8>}]} {
    %c0 = arith.constant 0 : index
    %c0_0 = arith.constant 0 : index
    %0 = vector.load %arg3[%c0, %c0_0] : memref<32x32xf32, #tpu.memory_space<vmem>>, vector<32x32xf32>
    %c0_1 = arith.constant 0 : index
    %c0_2 = arith.constant 0 : index
    %1 = vector.load %arg4[%c0_1, %c0_2] : memref<32x8xf32, #tpu.memory_space<vmem>>, vector<32x8xf32>
    %cst = arith.constant dense<0.000000e+00> : vector<32x8xf32>
    %2 = tpu.matmul %0, %1, %cst {dimension_numbers = #tpu.dot_dimension_numbers<[1], [0], [0], [1], [0, 0, 1, 1], [], []>} : vector<32x32xf32>, vector<32x8xf32>, vector<32x8xf32> -> vector<32x8xf32>
    %c0_3 = arith.constant 0 : index
    %c0_4 = arith.constant 0 : index
    %3 = vector.load %arg5[%c0_3, %c0_4] : memref<32x8xf32, #tpu.memory_space<vmem>>, vector<32x8xf32>
    tpu.vector_store %arg5[%c0_3, %c0_4], %2 {strides = array<i32>} : memref<32x8xf32, #tpu.memory_space<vmem>>, vector<32x8xf32>,
    return
  }
  func.func @transform_0(%arg0: i32, %arg1: i32, %arg2: i32) -> (i32, i32) {
    %c0_i32 = arith.constant 0 : i32
    return %arg0, %arg2 : i32, i32
  }
  func.func @transform_1(%arg0: i32, %arg1: i32, %arg2: i32) -> (i32, i32) {
    %c0_i32 = arith.constant 0 : i32
    return %arg2, %arg1 : i32, i32
  }
  func.func @transform_2(%arg0: i32, %arg1: i32, %arg2: i32) -> (i32, i32) {
    %c0_i32 = arith.constant 0 : i32
    return %arg0, %arg1 : i32, i32
  }
}

</mosaic_0001>

<bundles_post_ra>
// kernel: tpu_custom_call.1
= control target key start
LH: loop header
LB: loop body
LE: loop exit
PB: predicated region body
PF: predicated region fallthrough
CT: control target
= control target key end

     0   :  { %s541_s9 = smov 0   ;;  %s543_s10 = smov 0   ;;  %s586_s0 = inlined_call_operand.vmem [shape: f32[64,32], index: 0, kind: input, shape index: {}]   ;;  %s587_s1 = inlined_call_operand.vmem [shape: f32[32,8], index: 1, kind: input, shape index: {}]   ;;  %s588_s2 = inlined_call_operand.vmem [shape: f32[64,8], index: 2, kind: output, shape index: {}]  }
   0x1   :  { %s545_s11 = smov 0  }
   0x2 LB: > { %s31_s12 = sadd.s32 1, %s520_s10  ;;  %p433_p0 = scmp.ge.s32.totalorder %s524_s11, 1  ;;  %s524_s11 = sphi %s545_s11, %s12_s11   ;;  %s520_s10 = sphi %s543_s10, %s590_s10   ;;  %s516_s9 = sphi %s541_s9, %s589_s9  }
   0x3   : > { %p33_p1 = scmp.ge.s32.totalorder %s31_s12, 2  ;;  %p155_p2 = scmp.lt.s32.totalorder %s524_s11, 3 }
   0x5   : > { %s592_s12 = smov (%p33_p1, %s31_s12), 0  ;;  %p156_p3 = pnand %p433_p0, %p155_p2 }
   0x6   : > { %v222_v0 = vld [vmem:[%s587_s1] sm:$0xff] (!%p156_p3)  ;;  %v223_v1 = vld [vmem:[%s587_s1 + $0x8] sm:$0xff] (!%p156_p3)  ;;  %v224_v2 = vld [vmem:[%s587_s1 + $0x10] sm:$0xff] (!%p156_p3)  ;;  %s434_s19 = sshll.u32 (!%p156_p3), %s516_s9, 2  ;;  %vm226_vm0 = vcmask (!%p156_p3), 261120   ;;  %vm324_vm1 = vcmask (!%p156_p3), 64512  }
   0x7   : > { %159 = sbr.rel (%p156_p3) target bundleno = 233 (0xe9), region = 28  ;;  %v466_v3 = vpack.c.bf16 (!%p156_p3), %v223_v1, %v222_v0  ;;  %v225_v4 = vld [vmem:[%s587_s1 + $0x18] sm:$0xff] (!%p156_p3)  ;;  %p192_p4 = scmp.lt.s32.totalorder (!%p156_p3), %s434_s19, 7 }
   0x8   : > { %v470_v5 = vpack.c.bf16 (!%p156_p3), %v225_v4, %v224_v2 }
   0x9   : > { %467 = vmatprep.subr.bf16.mxu0 (!%p156_p3), %v466_v3  ;;  %474 = vmatprep.subr.bf16.mxu1 (!%p156_p3), %v466_v3 }
   0xa   : > { %469 = vmatpush3.bf16.msra.mxu0 (!%p156_p3), %v466_v3  ;;  %476 = vmatpush3.bf16.msra.mxu1 (!%p156_p3), %v466_v3 }
   0xb   : > { %471 = vmatprep.subr.bf16.mxu0 (!%p156_p3), %v470_v5  ;;  %475 = vmatprep.subr.bf16.mxu1 (!%p156_p3), %v470_v5 }
   0xe   : > { %s594_s19 = smov (!%p192_p4, %s434_s19), 7  ;;  %473 = vmatpush3.bf16.msra.mxu0 %v470_v5  ;;  %477 = vmatpush3.bf16.msra.mxu1 %v470_v5 }
   0xf   : > { %s435_s22 = sshll.u32 %s594_s19, 3 }
  0x10   : > { %s198_s25 = scalar_lea.vmem %s586_s0, %s435_s22  ;;  %s216_s28 = scalar_lea.vmem %s588_s2, %s435_s22 }
  0x11   : > { %v218_v6 = vld [vmem:[%s198_s25] sm:$0xff]  ;;  %v220_v7 = vld [vmem:[%s198_s25 + $0x10] sm:$0xff]  ;;  %v219_v8 = vld [vmem:[%s198_s25 + $0x8] sm:$0xff] }
  0x12   : > { %v221_v9 = vld [vmem:[%s198_s25 + $0x18] sm:$0xff]  ;;  %460 = vmatprep.mubr.msk.f32.mxu0 %vm226_vm0, %v218_v6  ;;  %463 = vmatprep.mubr.msk.f32.mxu1 %vm226_vm0, %v220_v7 }
  0x13   : > { %461 = vmatmul.mubr.msk.f32.vlgmr.msra.gmra.mrb[0].mxu0 %vm226_vm0, %v219_v8  ;;  %464 = vmatmul.mubr.msk.f32.vlgmr.msra.gmra.mrb[0].mxu1 %vm226_vm0, %v221_v9 }
  0xe6   : > { %v462_v10 = vpop.f32.mrb[0].mxu0  ;;  %v465_v11 = vpop.f32.mrb[0].mxu1 }
  0xe7   : > { %v305_v12 = vpop.f32.mrb[1].mxu0  ;;  %v315_v13 = vpop.f32.mrb[1].mxu1  ;;  %326 = vst.msk [vmem:[%s216_s28 + $0x8] sm:$0xff] %vm324_vm1, %v462_v10  ;;  %328 = vst.msk [vmem:[%s216_s28 + $0x18] sm:$0xff] %vm324_vm1, %v465_v11 }
  0xe8   : > { %325 = vst.msk [vmem:[%s216_s28] sm:$0xff] %vm324_vm1, %v305_v12  ;;  %327 = vst.msk [vmem:[%s216_s28 + $0x10] sm:$0xff] %vm324_vm1, %v315_v13 }
  0xe9 PF: > { %s12_s11 = sadd.s32 1, %s524_s11   ;;  %s589_s9 = smov %s520_s10 }
  0xea   : > { %p9_p5 = scmp.ge.s32.totalorder %s12_s11, 4   ;;  %s590_s10 = smov %s592_s12 }
  0xec   :  { %11 = sbr.rel (!%p9_p5) target bundleno = 2 (0x2), region = 61 }

</bundles_post_ra>
